<compile_context>
chip_gen: v6e
topology: v6e:2x2x1
jax: 0.10.0
libtpu: 0.0.40
codegen_flags: <defaults>
</compile_context>

<pallas_src>
import functools

import jax
import jax.numpy as jnp
from jax import lax
from jax.experimental import pallas as pl
from jax.experimental.pallas import tpu as pltpu


def _round_up(x, m):
    return -(-x // m) * m


def _is_two_tensorcore():
    """True on v7x-style parts (2 TensorCores share the 'parallel' grid axis)."""
    try:
        kind = jax.devices()[0].device_kind.lower()
    except Exception:
        return False
    return ("v7" in kind) or ("7x" in kind)


def _default_tile_b(batch_eff, cap=1024):
    """Fattest multiple-of-128 tile that never exceeds the batch.

    Single-TC parts (v5e/v6e): fewest, fattest tiles (each eliminated grid step
    saves ~0.35 us of fixed overhead, the dominant cost at these matmul sizes).
    v7x: keep an even, >=2 number of grid steps so the 'parallel' axis feeds
    both TensorCores.
    """
    b_floor = max(128, (batch_eff // 128) * 128)
    tile = min(cap, b_floor)
    if _is_two_tensorcore():
        n = pl.cdiv(batch_eff, tile)
        if n % 2 == 1 and b_floor >= 256:
            n_even = n + 1
            tile = min(b_floor, _round_up(pl.cdiv(batch_eff, n_even), 128))
    return tile


# ----------------------------- Pallas kernel ---------------------------------
def _mlp_policy_kernel(n_linear, bias_offsets, bias_sizes, x_ref, *refs):
    """refs = (wt_0, ..., wt_{n_linear-1}, bias_cat, mean_out)

    x_ref    : (TILE_B, ob_dim) f32  -- obs in natural layout (no wrapper transpose)
    wt_i     : (out_i, in_i)    bf16 -- pre-transposed weight, resident
    bias_cat : (sum_i pad8(out_i), TILE_B) f32 -- lane-replicated packed biases
    mean_out : (ac_dim, TILE_B) f32  -- lane-dense output
    """
    out_ref = refs[-1]
    bias_ref = refs[-2]
    wt_refs = refs[:-2]

    # In-kernel bf16 cast of the obs tile (halves nothing in HBM traffic but
    # feeds the MXU its native dtype).
    x_nat = x_ref[...].astype(jnp.bfloat16)                  # (TILE_B, ob_dim)

    # Layer 0: contract over the shared feature axis -> lane-dense (out, TILE_B).
    off, sz = bias_offsets[0], bias_sizes[0]
    h = lax.dot_general(
        wt_refs[0][...], x_nat,
        (((1,), (1,)), ((), ())),
        preferred_element_type=jnp.float32,
    ) + bias_ref[off:off + sz, :]                            # full-lane VPU add

    for i in range(1, n_linear):
        x = jnp.tanh(h).astype(jnp.bfloat16)                 # f32 tanh, bf16 act
        off, sz = bias_offsets[i], bias_sizes[i]
        h = jnp.dot(wt_refs[i][...], x,
                    preferred_element_type=jnp.float32) + bias_ref[off:off + sz, :]

    out_ref[...] = h.astype(out_ref.dtype)


# ------------------------------- wrapper --------------------------------------
def mlp_policy_forward(obs, weights, biases, logstd, *, tile_b=None):
    """Run the MLPPolicy (continuous) forward pass on TPU via Pallas.

    Args:
      obs:     (B, ob_dim) float32
      weights: list of (in, out) float32 arrays, length n_layers + 1
      biases:  list of (out,) float32 arrays, length n_layers + 1
      logstd:  (ac_dim,) float32
      tile_b:  optional batch tile override (rounded to a multiple of 128).
               Default: auto (fattest tile <= 1024, TC-count aware).

    Returns:
      mean  (B, ac_dim) float32
      scale (B, ac_dim) float32   -- broadcast of the raw logstd parameter
    """
    B, ob_dim = obs.shape
    ac_dim = weights[-1].shape[1]
    n_linear = len(weights)

    # Only very small batches (B < 128, e.g. single-obs get_action) get padded;
    # otherwise the last block is allowed to overhang (masked writeback).
    if B < 128:
        obs_in = jnp.pad(obs, ((0, 128 - B), (0, 0)))
        B_eff = 128
    else:
        obs_in = obs
        B_eff = B

    if tile_b is None:
        tile = _default_tile_b(B_eff)
    else:
        tile = max(128, min(_round_up(tile_b, 128),
                            max(128, (B_eff // 128) * 128)))
    n_tiles = pl.cdiv(B_eff, tile)

    # Pre-transpose weights to (out, in) and cast to bf16 (MXU-native); tiny,
    # resident across all grid steps (constant block index -> fetched once).
    wts = [w.T.astype(jnp.bfloat16) for w in weights]

    # Pack all biases into one column (each piece padded to 8 sublanes so the
    # static in-kernel slice starts are aligned), then lane-replicate to the
    # batch tile so the in-kernel add is broadcast-free.
    offsets, sizes, cols = [], [], []
    cur = 0
    for b in biases:
        out = b.shape[0]
        pad_out = _round_up(out, 8)
        offsets.append(cur)
        sizes.append(out)
        cols.append(jnp.zeros((pad_out,), jnp.float32).at[:out].set(
            b.astype(jnp.float32)))
        cur += pad_out
    bias_col = jnp.concatenate(cols)[:, None]                # (cur, 1) f32
    bias_cat = jnp.broadcast_to(bias_col, (cur, tile))       # (cur, tile) f32

    kernel = functools.partial(
        _mlp_policy_kernel, n_linear, tuple(offsets), tuple(sizes)
    )

    # obs blocks walk the batch (sublane) axis in natural layout; the output
    # walks the batch (lane) axis; weights & biases stay resident.
    # (For huge B one could add pipeline_mode=pl.Buffered(3) on the obs spec.)
    in_specs = [pl.BlockSpec((tile, ob_dim), lambda i: (i, 0))]
    for wt in wts:
        in_specs.append(pl.BlockSpec(wt.shape, lambda i: (0, 0)))
    in_specs.append(pl.BlockSpec(bias_cat.shape, lambda i: (0, 0)))

    out_specs = pl.BlockSpec((ac_dim, tile), lambda i: (0, i))
    out_shape = jax.ShapeDtypeStruct((ac_dim, B_eff), jnp.float32)

    mean_t = pl.pallas_call(
        kernel,
        grid=(n_tiles,),
        in_specs=in_specs,
        out_specs=out_specs,
        out_shape=out_shape,
        compiler_params=pltpu.CompilerParams(
            dimension_semantics=("parallel",),       # megacore split on v7x
            vmem_limit_bytes=32 * 1024 * 1024,       # footprint is <1 MiB anyway
        ),
    )(obs_in, *wts, bias_cat)

    # TODO(synk): downstream samplers could consume mean_t (ac_dim, B) directly
    # and stay lane-dense; the transpose here only matches the PyTorch layout.
    mean = mean_t[:, :B].T                           # (B, ac_dim)
    # Normal(mean, self.logstd): the module passes the raw logstd as the scale.
    scale = jnp.broadcast_to(logstd, mean.shape).astype(jnp.float32)
    return mean, scale


# --------------------------- parameter init ------------------------------------
def init_mlp_params(key, ob_dim, ac_dim, n_layers, size):
    """Deterministic init mimicking PyTorch nn.Linear defaults:
    U(-1/sqrt(fan_in), 1/sqrt(fan_in)) for both weight and bias."""
    weights, biases = [], []
    dims = [ob_dim] + [size] * n_layers + [ac_dim]
    for i in range(len(dims) - 1):
        fan_in, fan_out = dims[i], dims[i + 1]
        key, kw, kb = jax.random.split(key, 3)
        bound = 1.0 / jnp.sqrt(jnp.float32(fan_in))
        w = jax.random.uniform(
            kw, (fan_in, fan_out), jnp.float32, minval=-bound, maxval=bound
        )
        b = jax.random.uniform(
            kb, (fan_out,), jnp.float32, minval=-bound, maxval=bound
        )
        weights.append(w)
        biases.append(b)
    logstd = jnp.zeros((ac_dim,), jnp.float32)  # nn.Parameter(torch.zeros(ac_dim))
    return weights, biases, logstd


# Pure-JAX f32 reference for correctness check.
def reference_forward(obs, weights, biases, logstd):
    x = obs
    for i, (w, b) in enumerate(zip(weights, biases)):
        x = x @ w + b
        if i < len(weights) - 1:
            x = jnp.tanh(x)
    mean = x
    scale = jnp.broadcast_to(logstd, mean.shape)
    return mean, scale


if __name__ == "__main__":
    # Small shapes consistent with the module: obs (B, ob_dim), MLP with
    # n_layers hidden layers of width `size`, output ac_dim.
    B, ob_dim, ac_dim, n_layers, size = 256, 16, 4, 2, 32

    key = jax.random.PRNGKey(0)
    key, k_obs = jax.random.split(key)
    obs = jax.random.normal(k_obs, (B, ob_dim), jnp.float32)

    weights, biases, logstd = init_mlp_params(key, ob_dim, ac_dim, n_layers, size)

    mean, scale = mlp_policy_forward(obs, weights, biases, logstd)
    jax.block_until_ready((mean, scale))

    mean_ref, scale_ref = reference_forward(obs, weights, biases, logstd)
    assert mean.shape == (B, ac_dim) and scale.shape == (B, ac_dim)
    # Loose tolerance: kernel uses bf16 matmul inputs (f32 accumulate) vs f32 ref.
    assert jnp.allclose(mean, mean_ref, atol=5e-2, rtol=5e-2)
    assert jnp.allclose(scale, scale_ref, atol=1e-6)

    # Ragged batch (B % 128 != 0): exercises the pad-free overhanging last
    # block; garbage lanes never reach the kept columns.
    obs_r = obs[:200]
    mean_r, scale_r = mlp_policy_forward(obs_r, weights, biases, logstd)
    jax.block_until_ready((mean_r, scale_r))
    mean_rr, _ = reference_forward(obs_r, weights, biases, logstd)
    assert mean_r.shape == (200, ac_dim)
    assert jnp.allclose(mean_r, mean_rr, atol=5e-2, rtol=5e-2)

    print("KERNEL_OK")
</pallas_src>

<mosaic_0001>
module attributes {stable_mosaic.version = 11 : i64} {
  func.func @_mlp_policy_kernel(%arg0: i32, %arg1: memref<256x16xf32, #tpu.memory_space<vmem>>, %arg2: memref<32x16xbf16, #tpu.memory_space<vmem>>, %arg3: memref<32x32xbf16, #tpu.memory_space<vmem>>, %arg4: memref<4x32xbf16, #tpu.memory_space<vmem>>, %arg5: memref<72x256xf32, #tpu.memory_space<vmem>>, %arg6: memref<4x256xf32, #tpu.memory_space<vmem>>) attributes {dimension_semantics = [#tpu.dimension_semantics<parallel>], iteration_bounds = array<i64: 1>, scalar_prefetch = 0 : i64, scratch_operands = 0 : i64, tpu.core_type = #tpu.core_type<tc>, window_params = [{transform_indices = @transform_0, window_bounds = array<i64: 256, 16>}, {pipeline_mode = #tpu.pipeline_mode<synchronous>, transform_indices = @transform_1, window_bounds = array<i64: 32, 16>}, {pipeline_mode = #tpu.pipeline_mode<synchronous>, transform_indices = @transform_2, window_bounds = array<i64: 32, 32>}, {pipeline_mode = #tpu.pipeline_mode<synchronous>, transform_indices = @transform_3, window_bounds = array<i64: 4, 32>}, {pipeline_mode = #tpu.pipeline_mode<synchronous>, transform_indices = @transform_4, window_bounds = array<i64: 72, 256>}, {transform_indices = @transform_5, window_bounds = array<i64: 4, 256>}]} {
    %c0 = arith.constant 0 : index
    %c0_0 = arith.constant 0 : index
    %0 = vector.load %arg1[%c0, %c0_0] : memref<256x16xf32, #tpu.memory_space<vmem>>, vector<256x16xf32>
    %1 = arith.truncf %0 : vector<256x16xf32> to vector<256x16xbf16>
    %c0_1 = arith.constant 0 : index
    %c0_2 = arith.constant 0 : index
    %2 = vector.load %arg2[%c0_1, %c0_2] : memref<32x16xbf16, #tpu.memory_space<vmem>>, vector<32x16xbf16>
    %cst = arith.constant dense<0.000000e+00> : vector<32x256xf32>
    %3 = tpu.matmul %2, %1, %cst {dimension_numbers = #tpu.dot_dimension_numbers<[1], [1], [0], [0], [0, 0, 1, 0], [], []>} : vector<32x16xbf16>, vector<256x16xbf16>, vector<32x256xf32> -> vector<32x256xf32>
    %c0_3 = arith.constant 0 : index
    %c0_4 = arith.constant 0 : index
    %4 = vector.load %arg5[%c0_3, %c0_4] : memref<72x256xf32, #tpu.memory_space<vmem>>, vector<32x256xf32>
    %5 = arith.addf %3, %4 : vector<32x256xf32>
    %6 = math.tanh %5 : vector<32x256xf32>
    %7 = arith.truncf %6 : vector<32x256xf32> to vector<32x256xbf16>
    %c0_5 = arith.constant 0 : index
    %c0_6 = arith.constant 0 : index
    %8 = vector.load %arg3[%c0_5, %c0_6] : memref<32x32xbf16, #tpu.memory_space<vmem>>, vector<32x32xbf16>
    %cst_7 = arith.constant dense<0.000000e+00> : vector<32x256xf32>
    %9 = tpu.matmul %8, %7, %cst_7 {dimension_numbers = #tpu.dot_dimension_numbers<[1], [0], [0], [1], [0, 0, 1, 1], [], []>} : vector<32x32xbf16>, vector<32x256xbf16>, vector<32x256xf32> -> vector<32x256xf32>
    %c32 = arith.constant 32 : index
    %c0_8 = arith.constant 0 : index
    %10 = vector.load %arg5[%c32, %c0_8] : memref<72x256xf32, #tpu.memory_space<vmem>>, vector<32x256xf32>
    %11 = arith.addf %9, %10 : vector<32x256xf32>
    %12 = math.tanh %11 : vector<32x256xf32>
    %13 = arith.truncf %12 : vector<32x256xf32> to vector<32x256xbf16>
    %c0_9 = arith.constant 0 : index
    %c0_10 = arith.constant 0 : index
    %14 = vector.load %arg4[%c0_9, %c0_10] : memref<4x32xbf16, #tpu.memory_space<vmem>>, vector<4x32xbf16>
    %cst_11 = arith.constant dense<0.000000e+00> : vector<4x256xf32>
    %15 = tpu.matmul %14, %13, %cst_11 {dimension_numbers = #tpu.dot_dimension_numbers<[1], [0], [0], [1], [0, 0, 1, 1], [], []>} : vector<4x32xbf16>, vector<32x256xbf16>, vector<4x256xf32> -> vector<4x256xf32>
    %c64 = arith.constant 64 : index
    %c0_12 = arith.constant 0 : index
    %16 = vector.load %arg5[%c64, %c0_12] : memref<72x256xf32, #tpu.memory_space<vmem>>, vector<4x256xf32>
    %17 = arith.addf %15, %16 : vector<4x256xf32>
    %c0_13 = arith.constant 0 : index
    %c0_14 = arith.constant 0 : index
    %18 = vector.load %arg6[%c0_13, %c0_14] : memref<4x256xf32, #tpu.memory_space<vmem>>, vector<4x256xf32>
    tpu.vector_store %arg6[%c0_13, %c0_14], %17 {strides = array<i32>} : memref<4x256xf32, #tpu.memory_space<vmem>>, vector<4x256xf32>,
    return
  }
  func.func @transform_0(%arg0: i32) -> (i32, i32) {
    %c0_i32 = arith.constant 0 : i32
    %c0_i32_0 = arith.constant 0 : i32
    return %arg0, %c0_i32 : i32, i32
  }
  func.func @transform_1(%arg0: i32) -> (i32, i32) {
    %c0_i32 = arith.constant 0 : i32
    %c0_i32_0 = arith.constant 0 : i32
    %c0_i32_1 = arith.constant 0 : i32
    return %c0_i32, %c0_i32_0 : i32, i32
  }
  func.func @transform_2(%arg0: i32) -> (i32, i32) {
    %c0_i32 = arith.constant 0 : i32
    %c0_i32_0 = arith.constant 0 : i32
    %c0_i32_1 = arith.constant 0 : i32
    return %c0_i32, %c0_i32_0 : i32, i32
  }
  func.func @transform_3(%arg0: i32) -> (i32, i32) {
    %c0_i32 = arith.constant 0 : i32
    %c0_i32_0 = arith.constant 0 : i32
    %c0_i32_1 = arith.constant 0 : i32
    return %c0_i32, %c0_i32_0 : i32, i32
  }
  func.func @transform_4(%arg0: i32) -> (i32, i32) {
    %c0_i32 = arith.constant 0 : i32
    %c0_i32_0 = arith.constant 0 : i32
    %c0_i32_1 = arith.constant 0 : i32
    return %c0_i32, %c0_i32_0 : i32, i32
  }
  func.func @transform_5(%arg0: i32) -> (i32, i32) {
    %c0_i32 = arith.constant 0 : i32
    %c0_i32_0 = arith.constant 0 : i32
    return %c0_i32, %arg0 : i32, i32
  }
}

</mosaic_0001>

<bundles_post_ra>
// kernel: tpu_custom_call.1
= control target key start
LH: loop header
LB: loop body
LE: loop exit
PB: predicated region body
PF: predicated region fallthrough
CT: control target
= control target key end

     0   :  { %vm92_vm0 = vcmask 130048   ;;  %s692_s0 = inlined_call_operand.vmem [shape: f32[256,16], index: 0, kind: input, shape index: {}]   ;;  %s693_s1 = inlined_call_operand.vmem [shape: bf16[32,16], index: 1, kind: input, shape index: {}]   ;;  %s694_s2 = inlined_call_operand.vmem [shape: bf16[32,32], index: 2, kind: input, shape index: {}]   ;;  %s695_s3 = inlined_call_operand.vmem [shape: bf16[4,32], index: 3, kind: input, shape index: {}]   ;;  %s696_s4 = inlined_call_operand.vmem [shape: f32[72,256], index: 4, kind: input, shape index: {}]   ;;  %s697_s5 = inlined_call_operand.hbm [shape: f32[4,256], index: 5, kind: output, shape index: {}]  }
   0x1   :  { %v52_v0 = vld [vmem:[%s692_s0 + $0xf0] sm:$0xff]  ;;  %v53_v1 = vld [vmem:[%s692_s0 + $0xf8] sm:$0xff]  ;;  %v50_v5 = vld [vmem:[%s692_s0 + $0xe0] sm:$0xff] }
   0x2   :  { %v36_v2 = vld [vmem:[%s692_s0 + $0x70] sm:$0xff]  ;;  %v69_v3 = vpack.c.bf16 %v53_v1, %v52_v0  ;;  %v37_v4 = vld [vmem:[%s692_s0 + $0x78] sm:$0xff]  ;;  %v51_v6 = vld [vmem:[%s692_s0 + $0xe8] sm:$0xff] }
   0x3   :  { %v61_v7 = vpack.c.bf16 %v37_v4, %v36_v2  ;;  %v68_v8 = vpack.c.bf16 %v51_v6, %v50_v5  ;;  %v34_v9 = vld [vmem:[%s692_s0 + $0x60] sm:$0xff]  ;;  %v35_v10 = vld [vmem:[%s692_s0 + $0x68] sm:$0xff]  ;;  %v48_v13 = vld [vmem:[%s692_s0 + $0xd0] sm:$0xff] }
   0x4   :  { %401 = vmatprep.subr.msk.bf16.mxu0 %vm92_vm0, %v69_v3  ;;  %v60_v12 = vpack.c.bf16 %v35_v10, %v34_v9  ;;  %v49_v14 = vld [vmem:[%s692_s0 + $0xd8] sm:$0xff]  ;;  %v32_v17 = vld [vmem:[%s692_s0 + $0x50] sm:$0xff]  ;;  %v411_v19 = vld [vmem:[%s693_s1] sm:$0xff]  }
   0x5   :  { %v121_v11 = vsel %vm92_vm0, %v61_v7, 0  ;;  %v67_v16 = vpack.c.bf16 %v49_v14, %v48_v13  ;;  %v33_v18 = vld [vmem:[%s692_s0 + $0x58] sm:$0xff]  ;;  %397 = vmatprep.mubr.msk.bf16.mxu0 %vm92_vm0, %v411_v19 }
   0x6   :  { %382 = vmatpush3.bf16.xpose.msra.mxu0 %v121_v11  ;;  %v118_v15 = vsel %vm92_vm0, %v60_v12, 0  ;;  %v59_v20 = vpack.c.bf16 %v33_v18, %v32_v17 }
   0x7   :  { %402 = vmatprep.subr.msk.bf16.mxu0 %vm92_vm0, %v68_v8 }
   0xe   :  { %384 = vmatpush3.bf16.xpose.msra.mxu0 %v118_v15 }
   0xf   :  { %403 = vmatprep.subr.msk.bf16.mxu0 %vm92_vm0, %v67_v16 }
  0x10   :  { %10 = vsyncpa [#allocation3], 0  ;;  %v46_v21 = vld [vmem:[%s692_s0 + $0xc0] sm:$0xff]  ;;  %v47_v22 = vld [vmem:[%s692_s0 + $0xc8] sm:$0xff]  ;;  %v115_v23 = vsel %vm92_vm0, %v59_v20, 0  ;;  %v469_v58 = vmov 0  }
  0x11   :  { %v66_v24 = vpack.c.bf16 %v47_v22, %v46_v21  ;;  %v30_v25 = vld [vmem:[%s692_s0 + $0x40] sm:$0xff]  ;;  %v31_v26 = vld [vmem:[%s692_s0 + $0x48] sm:$0xff]  ;;  %v44_v28 = vld [vmem:[%s692_s0 + $0xb0] sm:$0xff]  ;;  %273 = vmatprep.mubr.bf16.mxu1 %v469_v58  ;;  %vm234_vm1 = vcmask 261120   ;;  %s470_s23 = smov [#allocation2]  }
  0x12   :  { %v58_v27 = vpack.c.bf16 %v31_v26, %v30_v25  ;;  %v45_v29 = vld [vmem:[%s692_s0 + $0xb8] sm:$0xff]  ;;  %v28_v32 = vld [vmem:[%s692_s0 + $0x30] sm:$0xff]  ;;  %v42_v35 = vld [vmem:[%s692_s0 + $0xa0] sm:$0xff]  ;;  %s364_s24 = sshll.u32 %s470_s23, 4  ;;  %s365_s24 = int_to_ptr.vmem [resolvable:$true] %s364_s24 }
  0x13   :  { %v65_v31 = vpack.c.bf16 %v45_v29, %v44_v28  ;;  %v29_v33 = vld [vmem:[%s692_s0 + $0x38] sm:$0xff]  ;;  %v43_v36 = vld [vmem:[%s692_s0 + $0xa8] sm:$0xff]  ;;  %v26_v39 = vld [vmem:[%s692_s0 + $0x20] sm:$0xff]  ;;  %p452_p1 = scmp.lt.s32.totalorder %s365_s24, %s365_s24 }
  0x14   :  { %v112_v30 = vsel %vm92_vm0, %v58_v27, 0  ;;  %v57_v34 = vpack.c.bf16 %v29_v33, %v28_v32  ;;  %v64_v38 = vpack.c.bf16 %v43_v36, %v42_v35  ;;  %v27_v40 = vld [vmem:[%s692_s0 + $0x28] sm:$0xff]  ;;  %v40_v42 = vld [vmem:[%s692_s0 + $0x90] sm:$0xff]  ;;  %v41_v43 = vld [vmem:[%s692_s0 + $0x98] sm:$0xff] }
  0x15   :  { %v56_v41 = vpack.c.bf16 %v27_v40, %v26_v39  ;;  %v63_v45 = vpack.c.bf16 %v41_v43, %v40_v42  ;;  %v24_v46 = vld [vmem:[%s692_s0 + $0x10] sm:$0xff]  ;;  %v25_v47 = vld [vmem:[%s692_s0 + $0x18] sm:$0xff]  ;;  %v38_v49 = vld [vmem:[%s692_s0 + $0x80] sm:$0xff] }
  0x16   :  { %386 = vmatpush3.bf16.xpose.msra.mxu0 %v115_v23  ;;  %v109_v37 = vsel %vm92_vm0, %v57_v34, 0  ;;  %v55_v48 = vpack.c.bf16 %v25_v47, %v24_v46  ;;  %v39_v50 = vld [vmem:[%s692_s0 + $0x88] sm:$0xff]  ;;  %v22_v53 = vld [vmem:[%s692_s0] sm:$0xff]  ;;  %v77_v63 = vld [vmem:[%s696_s4 + $0x18] sm:$0xff] }
  0x17   :  { %404 = vmatprep.subr.msk.bf16.mxu0 %vm92_vm0, %v66_v24  ;;  %v106_v44 = vsel %vm92_vm0, %v56_v41, 0  ;;  %v62_v52 = vpack.c.bf16 %v39_v50, %v38_v49  ;;  %v23_v54 = vld [vmem:[%s692_s0 + $0x8] sm:$0xff]  ;;  %v80_v4 = vld [vmem:[%s696_s4 + $0x30] sm:$0xff]  ;;  %v78_v5 = vld [vmem:[%s696_s4 + $0x20] sm:$0xff] }
  0x18   :  { %v103_v51 = vsel %vm92_vm0, %v55_v48, 0  ;;  %v54_v55 = vpack.c.bf16 %v23_v54, %v22_v53  ;;  %v412_v57 = vld [vmem:[%s693_s1 + $0x8] sm:$0xff]   ;;  %v81_v9 = vld [vmem:[%s696_s4 + $0x38] sm:$0xff]  ;;  %v76_v10 = vld [vmem:[%s696_s4 + $0x10] sm:$0xff] }
  0x19   :  { %v79_v1 = vld [vmem:[%s696_s4 + $0x28] sm:$0xff]  ;;  %v74_v14 = vld [vmem:[%s696_s4] sm:$0xff]  ;;  %v222_v42 = vld [vmem:[%s696_s4 + $0x70] sm:$0xff] }
  0x1a   :  { %v100_v56 = vsel %vm92_vm0, %v54_v55, 0  ;;  %v75_v7 = vld [vmem:[%s696_s4 + $0x8] sm:$0xff]  ;;  %v220_v43 = vld [vmem:[%s696_s4 + $0x60] sm:$0xff]  ;;  %v223_v47 = vld [vmem:[%s696_s4 + $0x78] sm:$0xff] }
  0x1b   :  { %v414_v32 = vld [vmem:[%s694_s2 + $0x8] sm:$0xff]   ;;  %v218_v48 = vld [vmem:[%s696_s4 + $0x50] sm:$0xff] }
  0x1c   :  { %v221_v39 = vld [vmem:[%s696_s4 + $0x68] sm:$0xff] }
  0x1e   :  { %388 = vmatpush3.bf16.xpose.msra.mxu0 %v112_v30 }
  0x1f   :  { %405 = vmatprep.subr.msk.bf16.mxu0 %vm92_vm0, %v65_v31  ;;  %v413_v31 = vld [vmem:[%s694_s2] sm:$0xff]  }
  0x26   :  { %390 = vmatpush3.bf16.xpose.msra.mxu0 %v109_v37  ;;  %v219_v37 = vld [vmem:[%s696_s4 + $0x58] sm:$0xff] }
  0x27   :  { %406 = vmatprep.subr.msk.bf16.mxu0 %vm92_vm0, %v64_v38 }
  0x2e   :  { %392 = vmatpush3.bf16.xpose.msra.mxu0 %v106_v44 }
  0x2f   :  { %407 = vmatprep.subr.msk.bf16.mxu0 %vm92_vm0, %v63_v45  ;;  %v217_v45 = vld [vmem:[%s696_s4 + $0x48] sm:$0xff] }
  0x36   :  { %394 = vmatpush3.bf16.xpose.msra.mxu0 %v103_v51 }
  0x37   :  { %408 = vmatprep.subr.msk.bf16.mxu0 %vm92_vm0, %v62_v52  ;;  %v216_v52 = vld [vmem:[%s696_s4 + $0x40] sm:$0xff] }
  0x3e   :  { %396 = vmatpush3.bf16.xpose.msra.mxu0 %v100_v56 }
  0x45   :  { %398 = vmatmul.mubr.msk.bf16.vlgmr.msra.gmra.mxu0 %vm92_vm0, %v411_v19 }
  0x46   :  { %399 = vmatprep.mubr.msk.bf16.mxu0 %vm92_vm0, %v412_v57 }
  0x4d   :  { %400 = vmatmul.mubr.msk.bf16.gmra.mxu0 %vm92_vm0, %v412_v57 }
 0x105   :  { %v181_v59 = vpop.f32.mrf.mxu0 }
 0x106   :  { %v182_v18 = vadd.f32 %v181_v59, %v74_v14 }
 0x107   :  { %v183_v60 = vpop.f32.mrf.mxu0 }
 0x108   :  { %v184_v15 = vadd.f32 %v183_v60, %v75_v7 }
 0x109   :  { %v185_v61 = vpop.f32.mrf.mxu0 }
 0x10a   :  { %v186_v17 = vadd.f32 %v185_v61, %v76_v10 }
 0x10b   :  { %v187_v62 = vpop.f32.mrf.mxu0 }
 0x10c   :  { %v188_v2 = vadd.f32 %v187_v62, %v77_v63 }
 0x10d   :  { %v191_v0 = vpop.f32.mrf.mxu0 }
 0x10e   :  { %415 = vtanh.f32 %v188_v2  ;;  %v192_v12 = vadd.f32 %v191_v0, %v78_v5  ;;  %v306_v5 = vld [vmem:[%s695_s3] sm:$0x3]  ;;  %s447_s3 = scalar_lea.vmem %s365_s24, 128 }
 0x10f   :  { %v193_v3 = vpop.f32.mrf.mxu0  ;;  %p448_p0 = scmp.ne.s32.totalorder %s365_s24, %s447_s3  ;;  %p453_p2 = scmp.lt.s32.totalorder %s447_s3, %s447_s3 }
 0x110   :  { %v194_v6 = vadd.f32 %v193_v3, %v79_v1 }
 0x111   :  { %v195_v8 = vpop.f32.mrf.mxu0  ;;  %p454_p3 = por %p453_p2, %p452_p1 }
 0x112   :  { %v196_v11 = vadd.f32 %v195_v8, %v80_v4  ;;  %417 = vtanh.f32 %v194_v6  ;;  %v307_v6 = vld [vmem:[%s696_s4 + $0x80] sm:$0xf]  ;;  %v308_v8 = vld [vmem:[%s696_s4 + $0x88] sm:$0xf] }
 0x113   :  { %v197_v13 = vpop.f32.mrf.mxu0  ;;  %p455_p4 = pnand %p454_p3, %p448_p0 }
 0x114   :  { %v198_v16 = vadd.f32 %v197_v13, %v81_v9  ;;  %419 = vtanh.f32 %v196_v11 }
 0x116   :  { %421 = vtanh.f32 %v198_v16 }
 0x117   :  { %423 = vtanh.f32 %v192_v12 }
 0x118   :  { %425 = vtanh.f32 %v184_v15 }
 0x119   :  { %427 = vtanh.f32 %v186_v17 }
 0x11a   :  { %429 = vtanh.f32 %v182_v18 }
 0x11b   :  { %v416_v19 = vpop.eup %415 }
 0x11f   :  { %v418_v20 = vpop.eup %417 }
 0x121   :  { %v420_v21 = vpop.eup %419 }
 0x123   :  { %v422_v22 = vpop.eup %421 }
 0x124   :  { %v424_v23 = vpop.eup %423  ;;  %v211_v24 = vpack.c.bf16 %v422_v22, %v418_v20 }
 0x125   :  { %v426_v25 = vpop.eup %425  ;;  %v210_v26 = vpack.c.bf16 %v420_v21, %v424_v23 }
 0x126   :  { %v428_v27 = vpop.eup %427  ;;  %253 = vmatprep.subr.bf16.mxu1 %v211_v24  ;;  %v209_v28 = vpack.c.bf16 %v416_v19, %v426_v25 }
 0x127   :  { %254 = vmatpush1.bf16.msra.mxu1 %v210_v26  ;;  %v430_v29 = vpop.eup %429 }
 0x128   :  { %255 = vmatprep.subr.bf16.mxu1 %v209_v28  ;;  %v208_v30 = vpack.c.bf16 %v428_v27, %v430_v29 }
 0x12b   :  { %256 = vmatpush1.bf16.msra.mxu1 %v208_v30 }
 0x12e   :  { %378 = vmatmul.mubr.msk.bf16.vlgmr.msra.gmra.mxu1 %vm234_vm1, %v413_v31 }
 0x12f   :  { %283 = vmatprep.mubr.bf16.mxu1 %v469_v58 }
 0x136   :  { %379 = vmatmul.mubr.msk.bf16.gmra.mxu1 %vm234_vm1, %v414_v32 }
 0x137   :  { %344 = vmatprep.mubr.bf16.mxu1 %v469_v58 }
 0x1ee   :  { %v275_v33 = vpop.f32.mrf.mxu1 }
 0x1ef   :  { %v276_v56 = vadd.f32 %v275_v33, %v216_v52 }
 0x1f0   :  { %v277_v34 = vpop.f32.mrf.mxu1 }
 0x1f1   :  { %v278_v53 = vadd.f32 %v277_v34, %v217_v45 }
 0x1f2   :  { %v279_v35 = vpop.f32.mrf.mxu1 }
 0x1f3   :  { %v280_v55 = vadd.f32 %v279_v35, %v218_v48 }
 0x1f4   :  { %v281_v36 = vpop.f32.mrf.mxu1 }
 0x1f5   :  { %v282_v40 = vadd.f32 %v281_v36, %v219_v37 }
 0x1f6   :  { %v285_v38 = vpop.f32.mrf.mxu1 }
 0x1f7   :  { %431 = vtanh.f32 %v282_v40  ;;  %v286_v50 = vadd.f32 %v285_v38, %v220_v43 }
 0x1f8   :  { %v287_v41 = vpop.f32.mrf.mxu1 }
 0x1f9   :  { %v288_v44 = vadd.f32 %v287_v41, %v221_v39 }
 0x1fa   :  { %v289_v46 = vpop.f32.mrf.mxu1 }
 0x1fb   :  { %v290_v49 = vadd.f32 %v289_v46, %v222_v42  ;;  %433 = vtanh.f32 %v288_v44 }
 0x1fc   :  { %v291_v51 = vpop.f32.mrf.mxu1 }
 0x1fd   :  { %v292_v54 = vadd.f32 %v291_v51, %v223_v47  ;;  %435 = vtanh.f32 %v290_v49 }
 0x1ff   :  { %437 = vtanh.f32 %v292_v54 }
 0x200   :  { %439 = vtanh.f32 %v286_v50 }
 0x201   :  { %441 = vtanh.f32 %v278_v53 }
 0x202   :  { %443 = vtanh.f32 %v280_v55 }
 0x203   :  { %445 = vtanh.f32 %v276_v56 }
 0x204   :  { %v432_v57 = vpop.eup %431 }
 0x208   :  { %v434_v58 = vpop.eup %433 }
 0x20a   :  { %v436_v59 = vpop.eup %435 }
 0x20c   :  { %v438_v60 = vpop.eup %437 }
 0x20d   :  { %v440_v61 = vpop.eup %439  ;;  %v305_v62 = vpack.c.bf16 %v438_v60, %v434_v58 }
 0x20e   :  { %v442_v63 = vpop.eup %441  ;;  %v304_v0 = vpack.c.bf16 %v436_v59, %v440_v61 }
 0x20f   :  { %v444_v1 = vpop.eup %443  ;;  %324 = vmatprep.subr.bf16.mxu1 %v305_v62  ;;  %v303_v2 = vpack.c.bf16 %v432_v57, %v442_v63 }
 0x210   :  { %325 = vmatpush1.bf16.msra.mxu1 %v304_v0  ;;  %v446_v3 = vpop.eup %445 }
 0x211   :  { %326 = vmatprep.subr.bf16.mxu1 %v303_v2  ;;  %v302_v4 = vpack.c.bf16 %v444_v1, %v446_v3 }
 0x214   :  { %327 = vmatpush1.bf16.msra.mxu1 %v302_v4 }
 0x217   :  { %380 = vmatmul.mubr.msk.bf16.vlgmr.msra.gmra.mxu1 %vm234_vm1, %v306_v5 }
 0x2d7   :  { %v346_v7 = vpop.f32.mrf.mxu1 }
 0x2d8   :  { %v347_v10 = vadd.f32 %v346_v7, %v307_v6 }
 0x2d9   :  { %v348_v9 = vpop.f32.mrf.mxu1 }
 0x2da   :  { %v349_v11 = vadd.f32 %v348_v9, %v308_v8 }
 0x2db   :  { %v350_v12 = vpop.f32.mrf.mxu1 }
 0x2dc   :  { %v355_v13 = vcombine.low %v347_v10, %v349_v11 }
 0x2dd   :  { %v351_v14 = vpop.f32.mrf.mxu1 }
 0x2de   :  { %357 = vst [vmem:[#allocation2] sm:$0xff] %v355_v13 }
 0x2df   :  { %458 = shalt.err (!%p455_p4)
}
 0x2e0   :  { %367 = dma.vmem_to_hbm [thread:$0]  %s365_s24, 128, %s697_s5, [#allocation3]  }
 0x2e1   :  { %467 = dma.done.wait [#allocation3], 128  }
 0x2e2   :  { %468 = vsyncadd [#allocation3], 4294967168 }
 0x2e3   :  { %371 = vsyncpa [#allocation3], 1 }

</bundles_post_ra>
